<compile_context>
chip_gen: v5e
topology: v5e:2x2
jax: 0.10.0
libtpu: 0.0.40
codegen_flags: <defaults>
</compile_context>

<pallas_src>
import math

import jax
import jax.numpy as jnp
from jax.experimental import pallas as pl
from jax.experimental.pallas import tpu as pltpu


def _select_tile_n(n, tile_n):
    """Lane-aligned batch tile; keep >= 2 grid steps when the batch allows so
    the "parallel" batch axis can shard across both TensorCores on v7x."""
    tile = max(128, (int(tile_n) // 128) * 128)
    if n > 128:
        half = (((n + 1) // 2) + 127) // 128 * 128  # ceil(n/2), lane-aligned
        tile = min(tile, half)
    return tile


def _make_mlp_kernel(modes, matmul_dtype):
    """Kernel computing a full MLP forward pass on one batch tile.

    Ref order: x, w0, b0, w1, b1, ..., w{L-1}, b{L-1}, out
      x:   (in_dim, TILE_N)      batch on the lane axis
      w_i: layout depends on per-layer mode (see pinn_forward)
      b_i: (out_i, 1)            f32
      out: (out_last, TILE_N)
    Per-layer modes:
      "rank1_in"   : first layer with in_i == 1; w is (out_i, 1) f32.
                     y = w * h + b      (VPU broadcast multiply-add)
      "reduce_out" : out_i == 1; w passed transposed as (in_i, 1) f32.
                     y = sum(w * h, axis=0) + b   (VPU mul + XLU sublane reduce)
      "mxu"        : regular layer; w is (out_i, in_i) in matmul_dtype.
                     y = dot(w, h) + b  (MXU, f32 accumulation)
    """
    num_layers = len(modes)

    def kernel(*refs):
        x_ref = refs[0]
        out_ref = refs[-1]
        h = x_ref[...].astype(jnp.float32)  # (in_dim, TILE_N)

        for i, mode in enumerate(modes):
            w = refs[1 + 2 * i][...]
            b = refs[2 + 2 * i][...]  # (out_i, 1) f32
            if mode == "rank1_in":
                # K == 1 matmul is a rank-1 outer product: do it on the VPU.
                h = w * h + b
            elif mode == "reduce_out":
                # 1-row matmul -> elementwise multiply + cross-sublane reduce.
                h = jnp.sum(w * h, axis=0, keepdims=True) + b
            else:
                h = jnp.dot(
                    w,
                    h.astype(matmul_dtype),
                    preferred_element_type=jnp.float32,
                ) + b
            if i < num_layers - 1:
                h = jnp.tanh(h)

        out_ref[...] = h.astype(out_ref.dtype)

    return kernel


def pinn_forward(x, weights, biases, *, tile_n=2048, matmul_dtype=jnp.float32):
    """Forward pass of GrossPitaevskiiPINN.network as a single Pallas kernel.

    x:       (N, layers[0]) float32 collocation points
    weights: list of (out_i, in_i) float32 arrays (torch nn.Linear layout)
    biases:  list of (out_i,) float32 arrays
    returns: (N, layers[-1]) float32
    """
    num_layers = len(weights)
    n, in_dim = x.shape
    assert in_dim == weights[0].shape[1]
    out_dim = weights[-1].shape[0]

    tile = _select_tile_n(n, tile_n)

    # Only materialize a padded copy when the batch is not tile-aligned.
    rem = n % tile
    if rem == 0:
        n_pad = n
        x_t = x.T
    else:
        n_pad = n + (tile - rem)
        x_t = jnp.zeros((in_dim, n_pad), jnp.float32).at[:, :n].set(x.T)

    # Per-layer execution modes + weight layouts (decided once, in the wrapper,
    # so the kernel never re-casts / re-transposes grid-invariant weights).
    modes = []
    in_arrays = [x_t]
    in_specs = [pl.BlockSpec((in_dim, tile), lambda i: (0, i))]
    for li, (w, b) in enumerate(zip(weights, biases)):
        out_i, in_i = w.shape
        b2 = b.reshape(out_i, 1).astype(jnp.float32)
        if li == 0 and in_i == 1:
            modes.append("rank1_in")
            w_arr = w.astype(jnp.float32)            # (out_i, 1)
        elif out_i == 1:
            modes.append("reduce_out")
            w_arr = w.T.astype(jnp.float32)          # (in_i, 1)
        else:
            modes.append("mxu")
            w_arr = w.astype(matmul_dtype)           # pre-cast once here
        in_arrays += [w_arr, b2]
        # Constant index_maps: full-array blocks, same block every step, so
        # weights/biases stay VMEM-resident across the whole batch grid.
        in_specs += [
            pl.BlockSpec(w_arr.shape, lambda i: (0, 0)),
            pl.BlockSpec(b2.shape, lambda i: (0, 0)),
        ]

    kernel = _make_mlp_kernel(modes, matmul_dtype)
    grid = (n_pad // tile,)

    # Advisory cost estimate for XLA scheduling around this small custom call.
    flops = int(2 * n_pad * sum(int(w.shape[0]) * int(w.shape[1]) for w in weights))
    transcendentals = int(n_pad * sum(int(w.shape[0]) for w in weights[:-1]))
    param_bytes = sum(int(w.size) * 4 for w in weights) + sum(int(b.size) * 4 for b in biases)
    bytes_accessed = int(4 * n_pad * (in_dim + out_dim) + param_bytes)

    out_t = pl.pallas_call(
        kernel,
        out_shape=jax.ShapeDtypeStruct((out_dim, n_pad), jnp.float32),
        grid=grid,
        in_specs=in_specs,
        out_specs=pl.BlockSpec((out_dim, tile), lambda i: (0, i)),
        compiler_params=pltpu.CompilerParams(
            # Independent batch tiles -> shardable across TensorCores (v7x).
            dimension_semantics=("parallel",)
        ),
        cost_estimate=pl.CostEstimate(
            flops=flops,
            transcendentals=transcendentals,
            bytes_accessed=bytes_accessed,
        ),
    )(*in_arrays)

    # Back to the module's (N, out_dim) convention; drop batch padding.
    return out_t[:, :n].T


def init_params(layers, key):
    """Deterministic init mimicking torch.nn.Linear defaults:
    W, b ~ U(-1/sqrt(fan_in), 1/sqrt(fan_in)); W stored as (out, in)."""
    weights, biases = [], []
    for i in range(len(layers) - 1):
        fan_in, fan_out = layers[i], layers[i + 1]
        bound = 1.0 / math.sqrt(fan_in)
        key, kw, kb = jax.random.split(key, 3)
        w = jax.random.uniform(kw, (fan_out, fan_in), jnp.float32, -bound, bound)
        b = jax.random.uniform(kb, (fan_out,), jnp.float32, -bound, bound)
        weights.append(w)
        biases.append(b)
    return weights, biases


def reference_forward(x, weights, biases):
    h = x
    for i, (w, b) in enumerate(zip(weights, biases)):
        h = h @ w.T + b
        if i < len(weights) - 1:
            h = jnp.tanh(h)
    return h


if __name__ == "__main__":
    # Architecture consistent with the PINN: 1-D input coordinate, a few
    # 32-wide hidden layers, scalar perturbation output.
    layers = [1, 32, 32, 32, 1]
    batch = 1000  # non-multiple of the tile to exercise the padding path

    key = jax.random.PRNGKey(0)
    key, kx = jax.random.split(key)
    x = jax.random.uniform(kx, (batch, layers[0]), jnp.float32, -5.0, 5.0)

    weights, biases = init_params(layers, key)

    # f32 matmul dtype by default (PINN derivative accuracy); bf16 can be
    # enabled on v6e/v7x via matmul_dtype=jnp.bfloat16 if the loss budget allows.
    out = pinn_forward(x, weights, biases, tile_n=2048)
    out = jax.block_until_ready(out)

    ref = reference_forward(x, weights, biases)
    assert out.shape == (batch, layers[-1])
    assert jnp.allclose(out, ref, atol=1e-5, rtol=1e-5), "mismatch vs JAX reference"

    # Also exercise the tile-aligned (no padded copy) path.
    x2 = jax.random.uniform(key, (1024, layers[0]), jnp.float32, -5.0, 5.0)
    out2 = jax.block_until_ready(pinn_forward(x2, weights, biases, tile_n=2048))
    ref2 = reference_forward(x2, weights, biases)
    assert jnp.allclose(out2, ref2, atol=1e-5, rtol=1e-5), "mismatch (aligned path)"

    # TODO(synk): pde_loss / boundary_loss / weighted_hermite need autograd of
    # u w.r.t. the inputs (torch.autograd.grad); only forward() is a kernel.
    print("KERNEL_OK")
</pallas_src>

<mosaic_0001>
module attributes {stable_mosaic.version = 11 : i64} {
  func.func @kernel(%arg0: i32, %arg1: memref<1x512xf32, #tpu.memory_space<vmem>>, %arg2: memref<32x1xf32, #tpu.memory_space<vmem>>, %arg3: memref<32x1xf32, #tpu.memory_space<vmem>>, %arg4: memref<32x32xf32, #tpu.memory_space<vmem>>, %arg5: memref<32x1xf32, #tpu.memory_space<vmem>>, %arg6: memref<32x32xf32, #tpu.memory_space<vmem>>, %arg7: memref<32x1xf32, #tpu.memory_space<vmem>>, %arg8: memref<32x1xf32, #tpu.memory_space<vmem>>, %arg9: memref<1x1xf32, #tpu.memory_space<vmem>>, %arg10: memref<1x512xf32, #tpu.memory_space<vmem>>) attributes {dimension_semantics = [#tpu.dimension_semantics<parallel>], iteration_bounds = array<i64: 2>, scalar_prefetch = 0 : i64, scratch_operands = 0 : i64, tpu.core_type = #tpu.core_type<tc>, window_params = [{transform_indices = @transform_0, window_bounds = array<i64: 1, 512>}, {pipeline_mode = #tpu.pipeline_mode<synchronous>, transform_indices = @transform_1, window_bounds = array<i64: 32, 1>}, {pipeline_mode = #tpu.pipeline_mode<synchronous>, transform_indices = @transform_2, window_bounds = array<i64: 32, 1>}, {pipeline_mode = #tpu.pipeline_mode<synchronous>, transform_indices = @transform_3, window_bounds = array<i64: 32, 32>}, {pipeline_mode = #tpu.pipeline_mode<synchronous>, transform_indices = @transform_4, window_bounds = array<i64: 32, 1>}, {pipeline_mode = #tpu.pipeline_mode<synchronous>, transform_indices = @transform_5, window_bounds = array<i64: 32, 32>}, {pipeline_mode = #tpu.pipeline_mode<synchronous>, transform_indices = @transform_6, window_bounds = array<i64: 32, 1>}, {pipeline_mode = #tpu.pipeline_mode<synchronous>, transform_indices = @transform_7, window_bounds = array<i64: 32, 1>}, {pipeline_mode = #tpu.pipeline_mode<synchronous>, transform_indices = @transform_8, window_bounds = array<i64: 1, 1>}, {transform_indices = @transform_9, window_bounds = array<i64: 1, 512>}]} {
    %c0 = arith.constant 0 : index
    %c0_0 = arith.constant 0 : index
    %0 = vector.load %arg1[%c0, %c0_0] : memref<1x512xf32, #tpu.memory_space<vmem>>, vector<1x512xf32>
    %c0_1 = arith.constant 0 : index
    %c0_2 = arith.constant 0 : index
    %1 = vector.load %arg2[%c0_1, %c0_2] : memref<32x1xf32, #tpu.memory_space<vmem>>, vector<32x1xf32>
    %c0_3 = arith.constant 0 : index
    %c0_4 = arith.constant 0 : index
    %2 = vector.load %arg3[%c0_3, %c0_4] : memref<32x1xf32, #tpu.memory_space<vmem>>, vector<32x1xf32>
    %3 = vector.broadcast %1 : vector<32x1xf32> to vector<32x512xf32>
    %4 = vector.broadcast %0 : vector<1x512xf32> to vector<32x512xf32>
    %5 = arith.mulf %3, %4 : vector<32x512xf32>
    %6 = vector.broadcast %2 : vector<32x1xf32> to vector<32x512xf32>
    %7 = arith.addf %5, %6 : vector<32x512xf32>
    %8 = math.tanh %7 : vector<32x512xf32>
    %c0_5 = arith.constant 0 : index
    %c0_6 = arith.constant 0 : index
    %9 = vector.load %arg4[%c0_5, %c0_6] : memref<32x32xf32, #tpu.memory_space<vmem>>, vector<32x32xf32>
    %c0_7 = arith.constant 0 : index
    %c0_8 = arith.constant 0 : index
    %10 = vector.load %arg5[%c0_7, %c0_8] : memref<32x1xf32, #tpu.memory_space<vmem>>, vector<32x1xf32>
    %cst = arith.constant dense<0.000000e+00> : vector<32x512xf32>
    %11 = tpu.matmul %9, %8, %cst {dimension_numbers = #tpu.dot_dimension_numbers<[1], [0], [0], [1], [0, 0, 1, 1], [], []>} : vector<32x32xf32>, vector<32x512xf32>, vector<32x512xf32> -> vector<32x512xf32>
    %12 = vector.broadcast %10 : vector<32x1xf32> to vector<32x512xf32>
    %13 = arith.addf %11, %12 : vector<32x512xf32>
    %14 = math.tanh %13 : vector<32x512xf32>
    %c0_9 = arith.constant 0 : index
    %c0_10 = arith.constant 0 : index
    %15 = vector.load %arg6[%c0_9, %c0_10] : memref<32x32xf32, #tpu.memory_space<vmem>>, vector<32x32xf32>
    %c0_11 = arith.constant 0 : index
    %c0_12 = arith.constant 0 : index
    %16 = vector.load %arg7[%c0_11, %c0_12] : memref<32x1xf32, #tpu.memory_space<vmem>>, vector<32x1xf32>
    %cst_13 = arith.constant dense<0.000000e+00> : vector<32x512xf32>
    %17 = tpu.matmul %15, %14, %cst_13 {dimension_numbers = #tpu.dot_dimension_numbers<[1], [0], [0], [1], [0, 0, 1, 1], [], []>} : vector<32x32xf32>, vector<32x512xf32>, vector<32x512xf32> -> vector<32x512xf32>
    %18 = vector.broadcast %16 : vector<32x1xf32> to vector<32x512xf32>
    %19 = arith.addf %17, %18 : vector<32x512xf32>
    %20 = math.tanh %19 : vector<32x512xf32>
    %c0_14 = arith.constant 0 : index
    %c0_15 = arith.constant 0 : index
    %21 = vector.load %arg8[%c0_14, %c0_15] : memref<32x1xf32, #tpu.memory_space<vmem>>, vector<32x1xf32>
    %c0_16 = arith.constant 0 : index
    %c0_17 = arith.constant 0 : index
    %22 = vector.load %arg9[%c0_16, %c0_17] : memref<1x1xf32, #tpu.memory_space<vmem>>, vector<1x1xf32>
    %23 = vector.broadcast %21 : vector<32x1xf32> to vector<32x512xf32>
    %24 = arith.mulf %23, %20 : vector<32x512xf32>
    %cst_18 = arith.constant dense<0.000000e+00> : vector<512xf32>
    %25 = vector.multi_reduction <add>, %24, %cst_18 [0] : vector<32x512xf32> to vector<512xf32>
    %26 = vector.shape_cast %25 : vector<512xf32> to vector<1x512xf32>
    %27 = vector.broadcast %22 : vector<1x1xf32> to vector<1x512xf32>
    %28 = arith.addf %26, %27 : vector<1x512xf32>
    %c0_19 = arith.constant 0 : index
    %c0_20 = arith.constant 0 : index
    %29 = vector.load %arg10[%c0_19, %c0_20] : memref<1x512xf32, #tpu.memory_space<vmem>>, vector<1x512xf32>
    tpu.vector_store %arg10[%c0_19, %c0_20], %28 {strides = array<i32>} : memref<1x512xf32, #tpu.memory_space<vmem>>, vector<1x512xf32>,
    return
  }
  func.func @transform_0(%arg0: i32) -> (i32, i32) {
    %c0_i32 = arith.constant 0 : i32
    %c0_i32_0 = arith.constant 0 : i32
    return %c0_i32, %arg0 : i32, i32
  }
  func.func @transform_1(%arg0: i32) -> (i32, i32) {
    %c0_i32 = arith.constant 0 : i32
    %c0_i32_0 = arith.constant 0 : i32
    %c0_i32_1 = arith.constant 0 : i32
    return %c0_i32, %c0_i32_0 : i32, i32
  }
  func.func @transform_2(%arg0: i32) -> (i32, i32) {
    %c0_i32 = arith.constant 0 : i32
    %c0_i32_0 = arith.constant 0 : i32
    %c0_i32_1 = arith.constant 0 : i32
    return %c0_i32, %c0_i32_0 : i32, i32
  }
  func.func @transform_3(%arg0: i32) -> (i32, i32) {
    %c0_i32 = arith.constant 0 : i32
    %c0_i32_0 = arith.constant 0 : i32
    %c0_i32_1 = arith.constant 0 : i32
    return %c0_i32, %c0_i32_0 : i32, i32
  }
  func.func @transform_4(%arg0: i32) -> (i32, i32) {
    %c0_i32 = arith.constant 0 : i32
    %c0_i32_0 = arith.constant 0 : i32
    %c0_i32_1 = arith.constant 0 : i32
    return %c0_i32, %c0_i32_0 : i32, i32
  }
  func.func @transform_5(%arg0: i32) -> (i32, i32) {
    %c0_i32 = arith.constant 0 : i32
    %c0_i32_0 = arith.constant 0 : i32
    %c0_i32_1 = arith.constant 0 : i32
    return %c0_i32, %c0_i32_0 : i32, i32
  }
  func.func @transform_6(%arg0: i32) -> (i32, i32) {
    %c0_i32 = arith.constant 0 : i32
    %c0_i32_0 = arith.constant 0 : i32
    %c0_i32_1 = arith.constant 0 : i32
    return %c0_i32, %c0_i32_0 : i32, i32
  }
  func.func @transform_7(%arg0: i32) -> (i32, i32) {
    %c0_i32 = arith.constant 0 : i32
    %c0_i32_0 = arith.constant 0 : i32
    %c0_i32_1 = arith.constant 0 : i32
    return %c0_i32, %c0_i32_0 : i32, i32
  }
  func.func @transform_8(%arg0: i32) -> (i32, i32) {
    %c0_i32 = arith.constant 0 : i32
    %c0_i32_0 = arith.constant 0 : i32
    %c0_i32_1 = arith.constant 0 : i32
    return %c0_i32, %c0_i32_0 : i32, i32
  }
  func.func @transform_9(%arg0: i32) -> (i32, i32) {
    %c0_i32 = arith.constant 0 : i32
    %c0_i32_0 = arith.constant 0 : i32
    return %c0_i32, %arg0 : i32, i32
  }
}

</mosaic_0001>

<bundles_post_ra>
// kernel: tpu_custom_call.1
= control target key start
LH: loop header
LB: loop body
LE: loop exit
PB: predicated region body
PF: predicated region fallthrough
CT: control target
= control target key end

     0   :  { %s1490_s0 = inlined_call_operand.vmem [shape: f32[1,1024], index: 0, kind: input, shape index: {}]   ;;  %s1491_s1 = inlined_call_operand.vmem [shape: f32[32,1], index: 1, kind: input, shape index: {}]   ;;  %s1492_s2 = inlined_call_operand.vmem [shape: f32[32,1], index: 2, kind: input, shape index: {}]   ;;  %s1493_s3 = inlined_call_operand.vmem [shape: f32[32,32], index: 3, kind: input, shape index: {}]   ;;  %s1494_s4 = inlined_call_operand.vmem [shape: f32[32,1], index: 4, kind: input, shape index: {}]   ;;  %s1495_s5 = inlined_call_operand.vmem [shape: f32[32,32], index: 5, kind: input, shape index: {}]   ;;  %s1496_s6 = inlined_call_operand.vmem [shape: f32[32,1], index: 6, kind: input, shape index: {}]   ;;  %s1497_s7 = inlined_call_operand.vmem [shape: f32[32,1], index: 7, kind: input, shape index: {}]   ;;  %s1498_s8 = inlined_call_operand.<no memory space> [shape: f32[1,1], index: 8, kind: input, shape index: {}]   ;;  %s1499_s9 = inlined_call_operand.hbm [shape: f32[1,1024], index: 9, kind: output, shape index: {}]  }
   0x1   :  { %v14_v0 = vstv %s1498_s8 }
   0x2   :  { %15 = vst [vmem:[#allocation2] sm:$0x1] %v14_v0 }
   0x3   :  { %16 = vsyncpa [#allocation4], 0 }
   0x4   :  { %18 = vsyncpa [#allocation4 + $0x1], 0  ;;  %s1261_s11 = smov 0   ;;  %s1263_s12 = smov 0  }
   0x5   :  { %s1265_s13 = smov 0   ;;  %s1267_s14 = smov 0  }
   0x6 LB: > { %s961_s8 = sadd.s32 4294967295, %s1205_s14   ;;  %s962_s15 = sadd.s32 4294967294, %s1205_s14   ;;  %s1205_s14 = sphi %s1267_s14, %s1505_s14   ;;  %s1201_s13 = sphi %s1265_s13, %s1504_s13   ;;  %s1197_s12 = sphi %s1263_s12, %s1503_s12   ;;  %s1193_s11 = sphi %s1261_s11, %s1502_s11  }
   0x7   : > { %s1284_s16 = sadd.s32 1, %s1205_s14   ;;  %s225_s17 = sadd.s32 1, %s1201_s13 }
   0x8   : > { %s222_s18 = ssub.s32 %s1205_s14, %s1284_s16  ;;  %p235_p0 = scmp.ne.s32.totalorder %s1201_s13, %s1197_s12 }
   0x9   : > { %p223_p1 = scmp.eq.s32.totalorder %s222_s18, 0  ;;  %p236_p2 = scmp.eq.s32.totalorder %s961_s8, 1 }
   0xa   : > { %p241_p3 = scmp.ne.s32.totalorder %s1197_s12, %s1193_s11  ;;  %p242_p4 = scmp.eq.s32.totalorder %s962_s15, 1 }
   0xb   : > { %s1296_s19 = scalar_select %p223_p1, %s1201_s13, %s225_s17  }
   0xc   : > { %p1298_p5 = por %p236_p2, %p235_p0  ;;  %p1302_p6 = por %p242_p4, %p241_p3 }
   0xd   : > { %p965_p7 = scmp.ge.s32.totalorder %s1205_s14, 1  ;;  %p292_p8 = scmp.lt.s32.totalorder %s1205_s14, 3 }
   0xf   : > { %p293_p9 = pnand %p965_p7, %p292_p8 }
  0x10   : > { %s1370_s23 = sshll.u32 (!%p293_p9), %s961_s8, 2  ;;  %s324_s30 = sand.u32 (!%p293_p9), 1, %s1197_s12  }
  0x11   : > { %296 = sbr.rel (%p293_p9) target bundleno = 538 (0x21a), region = 56  ;;  %p328_p10 = scmp.lt.s32.totalorder (!%p293_p9), %s1370_s23, 7 }
  0x12   : > { %s966_s10 = sshll.u32 (!%p293_p9), %s324_s30, 2  ;;  %s901_s18 = scalar_lea.hbm (!%p293_p9), %s1499_s9, %s1370_s23 }
  0x13   : > { %s326_s22 = scalar_lea.vmem (!%p293_p9), [#allocation3], %s966_s10  ;;  %s905_s25 = sshll.u32 (!%p293_p9), %s901_s18, 4  ;;  %s906_s25 = int_to_ptr.hbm [resolvable:$true] %s905_s25 }
  0x14   : > { %s1157_s26 = sshra.s32 (!%p293_p9), %s906_s25, 4  ;;  %s1163_s29 = scalar_lea.hbm (!%p293_p9), %s1499_s9, 8  ;;  %s1158_s26 = int_to_ptr.hbm [resolvable:$true] %s1157_s26 }
  0x15   : > { %p1164_p0 = scmp.lt.s32.totalorder (!%p293_p9), %s1158_s26, %s1499_s9 }
  0x16   : > { %v341_v1 = vld [vmem:[%s1492_s2 + $0x18] sm:$0xff]  ;;  %v340_v2 = vld [vmem:[%s1492_s2 + $0x10] sm:$0xff]  ;;  %v1207_v4 = vmov 0   ;;  %v335_v5 = vld [vmem:[%s1491_s1 + $0x8] sm:$0xff]  ;;  %s329_s24 = scalar_select %p328_p10, %s1370_s23, 7  ;;  %vm467_vm0 = vcmask 261120  }
  0x17   : > { %v337_v3 = vld [vmem:[%s1491_s1 + $0x18] sm:$0xff]  ;;  %1046 = vset.pattern.permute.xlu2 %v1207_v4  ;;  %1045 = vset.pattern.permute.xlu1 %v1207_v4  ;;  %v336_v6 = vld [vmem:[%s1491_s1 + $0x10] sm:$0xff]  ;;  %v334_v7 = vld [vmem:[%s1491_s1] sm:$0xff]  ;;  %vm878_vm1 = vcmask 1040384   ;;  %vm880_vm2 = vcmask 1042434   ;;  %vm882_vm3 = vcmask 1041408  }
  0x18   : > { %1044 = vset.pattern.permute.xlu0 %v1207_v4  ;;  %404 = vperm.xlu1 %1045, %v341_v1   ;;  %v338_v8 = vld [vmem:[%s1492_s2] sm:$0xff]  ;;  %v339_v9 = vld [vmem:[%s1492_s2 + $0x8] sm:$0xff]  ;;  %v446_v10 = vld [vmem:[%s1494_s4 + $0x18] sm:$0xff]  ;;  %s330_s27 = scalar_lea.vmem %s1490_s0, %s329_s24  ;;  %s903_s24 = sshll.u32 %s326_s22, 4  ;;  %s904_s24 = int_to_ptr.vmem [resolvable:$true] %s903_s24 }
  0x19   : > { %399 = vperm.xlu2 %1046, %v340_v2   ;;  %359 = vperm.xlu0 %1044, %v337_v3   ;;  %v444_v11 = vld [vmem:[%s1494_s4 + $0x8] sm:$0xff]  ;;  %v445_v12 = vld [vmem:[%s1494_s4 + $0x10] sm:$0xff]  ;;  %v443_v13 = vld [vmem:[%s1494_s4] sm:$0xff]  ;;  %s891_s23 = scalar_lea.sflag [#allocation4], %s324_s30 }
  0x1a   : > { %v617_v14 = vld [vmem:[%s1496_s6 + $0x8] sm:$0xff]  ;;  %v616_v15 = vld [vmem:[%s1496_s6] sm:$0xff]  ;;  %v618_v16 = vld [vmem:[%s1496_s6 + $0x10] sm:$0xff] }
  0x1b   : > { %v784_v17 = vld [vmem:[%s1497_s7] sm:$0xff]  ;;  %v619_v18 = vld [vmem:[%s1496_s6 + $0x18] sm:$0xff]  ;;  %v785_v19 = vld [vmem:[%s1497_s7 + $0x8] sm:$0xff] }
  0x1c   : > { %v787_v20 = vld [vmem:[%s1497_s7 + $0x18] sm:$0xff]  ;;  %v786_v21 = vld [vmem:[%s1497_s7 + $0x10] sm:$0xff]  ;;  %v788_v22 = vld [vmem:[#allocation2] sm:$0x1] }
  0x1d   : > { %v333_v23 = vld [vmem:[%s330_s27] sm:$0xf]  ;;  %s1159_s27 = scalar_lea.hbm %s1158_s26, 4 }
  0x1e   : > { %v363_v24 = vperm.slane %v333_v23, 0  ;;  %v364_v25 = vperm.slane %v333_v23, 1  ;;  %v365_v26 = vperm.slane %v333_v23, 2  ;;  %v1377_v27 = vperm.slane %v333_v23, 3  ;;  %v442_v23 = vld [vmem:[%s1493_s3 + $0x18] sm:$0xff]  ;;  %p1160_p11 = scmp.ne.s32.totalorder %s1158_s26, %s1159_s27  ;;  %p1165_p1 = scmp.lt.s32.totalorder %s1163_s29, %s1159_s27 }
  0x20   : > { %349 = vperm.xlu1 %1045, %v335_v5   ;;  %p1161_p12 = pnand %p1160_p11, %p1298_p5  ;;  %p1166_p2 = por %p1165_p1, %p1164_p0 }
  0x21   : > { %354 = vperm.xlu0 %1044, %v336_v6   ;;  %344 = vperm.xlu2 %1046, %v334_v7  }
  0x22   : > { %p1162_p13 = pneg %p1161_p12 }
  0x24   : > { %p1167_p3 = pnand %p1166_p2, %p1162_p13 }
  0x28   : > { %389 = vperm.xlu1 %1045, %v338_v8  }
  0x29   : > { %394 = vperm.xlu0 %1044, %v339_v9   ;;  %464 = vperm.xlu2 %1046, %v446_v10  }
  0x30   : > { %454 = vperm.xlu1 %1045, %v444_v11  }
  0x31   : > { %459 = vperm.xlu0 %1044, %v445_v12   ;;  %449 = vperm.xlu2 %1046, %v443_v13  }
  0x38   : > { %627 = vperm.xlu1 %1045, %v617_v14   ;;  %v439_v14 = vld [vmem:[%s1493_s3] sm:$0xff] }
  0x39   : > { %622 = vperm.xlu0 %1044, %v616_v15   ;;  %632 = vperm.xlu2 %1046, %v618_v16  }
  0x40   : > { %791 = vperm.xlu1 %1045, %v784_v17  }
  0x41   : > { %637 = vperm.xlu0 %1044, %v619_v18   ;;  %796 = vperm.xlu2 %1046, %v785_v19  }
  0x48   : > { %806 = vperm.xlu1 %1045, %v787_v20   ;;  %v440_v20 = vld [vmem:[%s1493_s3 + $0x8] sm:$0xff] }
  0x49   : > { %801 = vperm.xlu0 %1044, %v786_v21   ;;  %863 = vperm.xlu2 %1046, %v788_v22   ;;  %v441_v22 = vld [vmem:[%s1493_s3 + $0x10] sm:$0xff] }
  0x73   : > { %v400_v34 = vpop.permute.xlu2 %399 }
  0x7b   : > { %v345_v50 = vpop.permute.xlu2 %344 }
  0x7c   : > { %v371_v51 = vmul.f32 %v363_v24, %v345_v50  ;;  %v372_v59 = vmul.f32 %v364_v25, %v345_v50  ;;  %v373_v63 = vmul.f32 %v365_v26, %v345_v50  ;;  %v374_v10 = vmul.f32 %v1377_v27, %v345_v50 }
  0x8a   : > { %v405_v28 = vpop.permute.xlu1 %404 }
  0x8b   : > { %v360_v29 = vpop.permute.xlu0 %359 }
  0x8c   : > { %v383_v30 = vmul.f32 %v363_v24, %v360_v29  ;;  %v384_v31 = vmul.f32 %v364_v25, %v360_v29  ;;  %v385_v32 = vmul.f32 %v365_v26, %v360_v29  ;;  %v386_v33 = vmul.f32 %v1377_v27, %v360_v29 }
  0x8e   : > { %v419_v35 = vadd.f32 %v405_v28, %v383_v30  ;;  %v420_v36 = vadd.f32 %v405_v28, %v384_v31  ;;  %v421_v37 = vadd.f32 %v405_v28, %v385_v32  ;;  %v422_v38 = vadd.f32 %v405_v28, %v386_v33  ;;  %v465_v31 = vpop.permute.xlu2 %464 }
  0x90   : > { %1047 = vtanh.f32 %v419_v35 }
  0x91   : > { %1049 = vtanh.f32 %v420_v36 }
  0x92   : > { %v350_v39 = vpop.permute.xlu1 %349  ;;  %1051 = vtanh.f32 %v421_v37 }
  0x93   : > { %v355_v40 = vpop.permute.xlu0 %354  ;;  %1053 = vtanh.f32 %v422_v38  ;;  %v375_v52 = vmul.f32 %v363_v24, %v350_v39  ;;  %v376_v53 = vmul.f32 %v364_v25, %v350_v39  ;;  %v377_v54 = vmul.f32 %v365_v26, %v350_v39 }
  0x94   : > { %v379_v41 = vmul.f32 %v363_v24, %v355_v40  ;;  %v380_v42 = vmul.f32 %v364_v25, %v355_v40  ;;  %v381_v43 = vmul.f32 %v365_v26, %v355_v40  ;;  %v382_v0 = vmul.f32 %v1377_v27, %v355_v40 }
  0x95   : > { %v378_v2 = vmul.f32 %v1377_v27, %v350_v39 }
  0x96   : > { %v1048_v44 = vpop.eup %1047  ;;  %v415_v45 = vadd.f32 %v400_v34, %v379_v41  ;;  %v416_v46 = vadd.f32 %v400_v34, %v380_v42  ;;  %v417_v47 = vadd.f32 %v400_v34, %v381_v43  ;;  %v418_v8 = vadd.f32 %v400_v34, %v382_v0  ;;  %v450_v43 = vpop.permute.xlu2 %449 }
  0x97   : > { %v1050_v48 = vpop.eup %1049  ;;  %492 = vmatpush.msra.mxu0 %v1048_v44 }
  0x98   : > { %v1052_v49 = vpop.eup %1051  ;;  %521 = vmatpush.msra.mxu1 %v1050_v48  ;;  %1055 = vtanh.f32 %v415_v45 }
  0x99   : > { %550 = vmatpush.msra.mxu2 %v1052_v49  ;;  %1057 = vtanh.f32 %v416_v46  ;;  %v1054_v56 = vpop.eup %1053 }
  0x9a   : > { %v390_v55 = vpop.permute.xlu1 %389  ;;  %1059 = vtanh.f32 %v417_v47  ;;  %579 = vmatpush.msra.mxu3 %v1054_v56 }
  0x9b   : > { %v395_v57 = vpop.permute.xlu0 %394  ;;  %v407_v58 = vadd.f32 %v390_v55, %v371_v51  ;;  %v408_v3 = vadd.f32 %v390_v55, %v372_v59  ;;  %v409_v5 = vadd.f32 %v390_v55, %v373_v63  ;;  %v410_v13 = vadd.f32 %v390_v55, %v374_v10 }
  0x9c   : > { %v411_v60 = vadd.f32 %v395_v57, %v375_v52  ;;  %v412_v61 = vadd.f32 %v395_v57, %v376_v53  ;;  %v413_v62 = vadd.f32 %v395_v57, %v377_v54  ;;  %v414_v7 = vadd.f32 %v395_v57, %v378_v2 }
  0x9d   : > { %1061 = vtanh.f32 %v407_v58 }
  0x9e   : > { %v1056_v1 = vpop.eup %1055  ;;  %1063 = vtanh.f32 %v411_v60 }
  0x9f   : > { %v1058_v4 = vpop.eup %1057  ;;  %1065 = vtanh.f32 %v412_v61  ;;  %493 = vmatpush.msra.mxu0 %v1056_v1  ;;  %v612_v61 = vld [vmem:[%s1495_s5] sm:$0xff] }
  0xa0   : > { %v1060_v6 = vpop.eup %1059  ;;  %1067 = vtanh.f32 %v413_v62  ;;  %522 = vmatpush.msra.mxu1 %v1058_v4 }
  0xa1   : > { %551 = vmatpush.msra.mxu2 %v1060_v6  ;;  %1069 = vtanh.f32 %v408_v3 }
  0xa2   : > { %1071 = vtanh.f32 %v409_v5  ;;  %v455_v38 = vpop.permute.xlu1 %454 }
  0xa3   : > { %v1062_v9 = vpop.eup %1061  ;;  %1073 = vtanh.f32 %v414_v7  ;;  %v460_v34 = vpop.permute.xlu0 %459 }
  0xa4   : > { %v1064_v11 = vpop.eup %1063  ;;  %1075 = vtanh.f32 %v418_v8 }
  0xa5   : > { %v1066_v12 = vpop.eup %1065  ;;  %494 = vmatpush.msra.mxu0 %v1064_v11  ;;  %1077 = vtanh.f32 %v410_v13 }
  0xa6   : > { %v1068_v15 = vpop.eup %1067  ;;  %523 = vmatpush.msra.mxu1 %v1066_v12 }
  0xa7   : > { %552 = vmatpush.msra.mxu2 %v1068_v15  ;;  %495 = vmatpush.msra.mxu0 %v1062_v9  ;;  %v1070_v16 = vpop.eup %1069  ;;  %v613_v9 = vld [vmem:[%s1495_s5 + $0x8] sm:$0xff]  ;;  %v615_v15 = vld [vmem:[%s1495_s5 + $0x18] sm:$0xff] }
  0xa8   : > { %968 = vmatmul.msk.f32.vlgmr.msra.gmra.mxu0 %vm467_vm0, %v439_v14  ;;  %v1072_v17 = vpop.eup %1071  ;;  %524 = vmatpush.msra.mxu1 %v1070_v16 }
  0xa9   : > { %v1074_v18 = vpop.eup %1073  ;;  %553 = vmatpush.msra.mxu2 %v1072_v17  ;;  %972 = vmatmul.msk.f32.vlgmr.msra.gmra.mxu1 %vm467_vm0, %v439_v14 }
  0xaa   : > { %v1076_v19 = vpop.eup %1075  ;;  %976 = vmatmul.msk.f32.vlgmr.msra.gmra.mxu2 %vm467_vm0, %v439_v14 }
  0xab   : > { %580 = vmatpush.msra.mxu3 %v1076_v19  ;;  %v1078_v21 = vpop.eup %1077 }
  0xad   : > { %581 = vmatpush.msra.mxu3 %v1074_v18 }
  0xaf   : > { %582 = vmatpush.msra.mxu3 %v1078_v21  ;;  %v628_v21 = vpop.permute.xlu1 %627 }
  0xb0   : > { %969 = vmatmul.msk.f32.gmra.mxu0 %vm467_vm0, %v440_v20  ;;  %980 = vmatmul.msk.f32.vlgmr.msra.gmra.mxu3 %vm467_vm0, %v439_v14  ;;  %v614_v14 = vld [vmem:[%s1495_s5 + $0x10] sm:$0xff] }
  0xb1   : > { %973 = vmatmul.msk.f32.gmra.mxu1 %vm467_vm0, %v440_v20 }
  0xb2   : > { %977 = vmatmul.msk.f32.gmra.mxu2 %vm467_vm0, %v440_v20 }
  0xb8   : > { %970 = vmatmul.msk.f32.gmra.mxu0 %vm467_vm0, %v441_v22  ;;  %981 = vmatmul.msk.f32.gmra.mxu3 %vm467_vm0, %v440_v20  ;;  %v623_v20 = vpop.permute.xlu0 %622 }
  0xb9   : > { %974 = vmatmul.msk.f32.gmra.mxu1 %vm467_vm0, %v441_v22 }
  0xba   : > { %978 = vmatmul.msk.f32.gmra.mxu2 %vm467_vm0, %v441_v22 }
  0xc0   : > { %971 = vmatmul.msk.f32.gmra.mxu0 %vm467_vm0, %v442_v23  ;;  %982 = vmatmul.msk.f32.gmra.mxu3 %vm467_vm0, %v441_v22 }
  0xc1   : > { %975 = vmatmul.msk.f32.gmra.mxu1 %vm467_vm0, %v442_v23 }
  0xc2   : > { %979 = vmatmul.msk.f32.gmra.mxu2 %vm467_vm0, %v442_v23 }
  0xc8   : > { %983 = vmatmul.msk.f32.gmra.mxu3 %vm467_vm0, %v442_v23 }
 0x125   : > { %v497_v24 = vpop.f32.mrf.mxu0 }
 0x126   : > { %v526_v25 = vpop.f32.mrf.mxu1  ;;  %v498_v46 = vadd.f32 %v497_v24, %v450_v43 }
 0x127   : > { %v527_v48 = vadd.f32 %v526_v25, %v450_v43 }
 0x12d   : > { %v500_v26 = vpop.f32.mrf.mxu0  ;;  %v555_v27 = vpop.f32.mrf.mxu2 }
 0x12e   : > { %v529_v28 = vpop.f32.mrf.mxu1  ;;  %v501_v41 = vadd.f32 %v500_v26, %v455_v38  ;;  %v556_v59 = vadd.f32 %v555_v27, %v450_v43  ;;  %v633_v26 = vpop.permute.xlu2 %632 }
 0x12f   : > { %v530_v47 = vadd.f32 %v529_v28, %v455_v38 }
 0x133   : > { %v1411_v29 = vpop.f32.mrf.mxu3 }
 0x134   : > { %v585_v6 = vadd.f32 %v1411_v29, %v450_v43 }
 0x135   : > { %v503_v30 = vpop.f32.mrf.mxu0  ;;  %v558_v32 = vpop.f32.mrf.mxu2 }
 0x136   : > { %v532_v33 = vpop.f32.mrf.mxu1  ;;  %v504_v36 = vadd.f32 %v503_v30, %v460_v34  ;;  %v559_v57 = vadd.f32 %v558_v32, %v455_v38  ;;  %v1442_v30 = vpop.permute.xlu0 %637 }
 0x137   : > { %v533_v44 = vadd.f32 %v532_v33, %v460_v34 }
 0x13b   : > { %v587_v35 = vpop.f32.mrf.mxu3 }
 0x13c   : > { %v588_v4 = vadd.f32 %v587_v35, %v455_v38 }
 0x13d   : > { %v506_v37 = vpop.f32.mrf.mxu0  ;;  %v561_v39 = vpop.f32.mrf.mxu2 }
 0x13e   : > { %v507_v40 = vadd.f32 %v506_v37, %v465_v31  ;;  %v535_v42 = vpop.f32.mrf.mxu1  ;;  %v562_v53 = vadd.f32 %v561_v39, %v460_v34 }
 0x13f   : > { %v536_v45 = vadd.f32 %v535_v42, %v465_v31 }
 0x140   : > { %1079 = vtanh.f32 %v507_v40 }
 0x141   : > { %1081 = vtanh.f32 %v504_v36 }
 0x142   : > { %1083 = vtanh.f32 %v536_v45 }
 0x143   : > { %1085 = vtanh.f32 %v501_v41  ;;  %v590_v49 = vpop.f32.mrf.mxu3 }
 0x144   : > { %1087 = vtanh.f32 %v533_v44  ;;  %v591_v0 = vadd.f32 %v590_v49, %v460_v34  ;;  %v1444_v34 = vpop.permute.xlu1 %791  ;;  %v797_v44 = vpop.permute.xlu2 %796 }
 0x145   : > { %1089 = vtanh.f32 %v498_v46  ;;  %v564_v51 = vpop.f32.mrf.mxu2  ;;  %v802_v49 = vpop.permute.xlu0 %801 }
 0x146   : > { %v1080_v50 = vpop.eup %1079  ;;  %1091 = vtanh.f32 %v530_v47  ;;  %v565_v54 = vadd.f32 %v564_v51, %v465_v31 }
 0x147   : > { %v1082_v52 = vpop.eup %1081  ;;  %664 = vmatpush.msrb.mxu0 %v1080_v50  ;;  %1093 = vtanh.f32 %v527_v48 }
 0x148   : > { %v1084_v55 = vpop.eup %1083  ;;  %1095 = vtanh.f32 %v565_v54 }
 0x149   : > { %v1086_v56 = vpop.eup %1085  ;;  %693 = vmatpush.msrb.mxu1 %v1084_v55  ;;  %665 = vmatpush.msrb.mxu0 %v1082_v52  ;;  %1097 = vtanh.f32 %v562_v53 }
 0x14a   : > { %v1088_v58 = vpop.eup %1087  ;;  %1099 = vtanh.f32 %v559_v57 }
 0x14b   : > { %v1090_v60 = vpop.eup %1089  ;;  %694 = vmatpush.msrb.mxu1 %v1088_v58  ;;  %666 = vmatpush.msrb.mxu0 %v1086_v56  ;;  %v593_v63 = vpop.f32.mrf.mxu3  ;;  %1101 = vtanh.f32 %v556_v59 }
 0x14c   : > { %v1092_v62 = vpop.eup %1091  ;;  %v594_v1 = vadd.f32 %v593_v63, %v465_v31  ;;  %v807_v56 = vpop.permute.xlu1 %806 }
 0x14d   : > { %695 = vmatpush.msrb.mxu1 %v1092_v62  ;;  %667 = vmatpush.msrb.mxu0 %v1090_v60  ;;  %v1094_v2 = vpop.eup %1093 }
 0x14e   : > { %984 = vmatmul.msk.f32.vlgmr.msrb.gmra.mxu0 %vm467_vm0, %v612_v61  ;;  %v1096_v3 = vpop.eup %1095  ;;  %1103 = vtanh.f32 %v594_v1 }
 0x14f   : > { %696 = vmatpush.msrb.mxu1 %v1094_v2  ;;  %722 = vmatpush.msrb.mxu2 %v1096_v3  ;;  %v1098_v5 = vpop.eup %1097  ;;  %1105 = vtanh.f32 %v591_v0 }
 0x150   : > { %988 = vmatmul.msk.f32.vlgmr.msrb.gmra.mxu1 %vm467_vm0, %v612_v61  ;;  %v1100_v7 = vpop.eup %1099  ;;  %1107 = vtanh.f32 %v588_v4 }
 0x151   : > { %723 = vmatpush.msrb.mxu2 %v1098_v5  ;;  %v1102_v8 = vpop.eup %1101  ;;  %1109 = vtanh.f32 %v585_v6 }
 0x153   : > { %724 = vmatpush.msrb.mxu2 %v1100_v7 }
 0x154   : > { %v1104_v10 = vpop.eup %1103 }
 0x155   : > { %751 = vmatpush.msrb.mxu3 %v1104_v10  ;;  %725 = vmatpush.msrb.mxu2 %v1102_v8  ;;  %v1106_v11 = vpop.eup %1105 }
 0x156   : > { %992 = vmatmul.msk.f32.vlgmr.msrb.gmra.mxu2 %vm467_vm0, %v612_v61  ;;  %985 = vmatmul.msk.f32.gmra.mxu0 %vm467_vm0, %v613_v9  ;;  %v1108_v12 = vpop.eup %1107 }
 0x157   : > { %752 = vmatpush.msrb.mxu3 %v1106_v11  ;;  %v1110_v13 = vpop.eup %1109 }
 0x158   : > { %989 = vmatmul.msk.f32.gmra.mxu1 %vm467_vm0, %v613_v9 }
 0x159   : > { %753 = vmatpush.msrb.mxu3 %v1108_v12 }
 0x15b   : > { %754 = vmatpush.msrb.mxu3 %v1110_v13 }
 0x15c   : > { %996 = vmatmul.msk.f32.vlgmr.msrb.gmra.mxu3 %vm467_vm0, %v612_v61 }
 0x15e   : > { %993 = vmatmul.msk.f32.gmra.mxu2 %vm467_vm0, %v613_v9  ;;  %986 = vmatmul.msk.f32.gmra.mxu0 %vm467_vm0, %v614_v14 }
 0x160   : > { %990 = vmatmul.msk.f32.gmra.mxu1 %vm467_vm0, %v614_v14 }
 0x164   : > { %997 = vmatmul.msk.f32.gmra.mxu3 %vm467_vm0, %v613_v9 }
 0x166   : > { %994 = vmatmul.msk.f32.gmra.mxu2 %vm467_vm0, %v614_v14  ;;  %987 = vmatmul.msk.f32.gmra.mxu0 %vm467_vm0, %v615_v15 }
 0x168   : > { %991 = vmatmul.msk.f32.gmra.mxu1 %vm467_vm0, %v615_v15 }
 0x16c   : > { %998 = vmatmul.msk.f32.gmra.mxu3 %vm467_vm0, %v614_v14 }
 0x16e   : > { %995 = vmatmul.msk.f32.gmra.mxu2 %vm467_vm0, %v615_v15 }
 0x174   : > { %999 = vmatmul.msk.f32.gmra.mxu3 %vm467_vm0, %v615_v15 }
 0x1cb   : > { %v669_v16 = vpop.f32.mrf.mxu0 }
 0x1cc   : > { %v670_v31 = vadd.f32 %v669_v16, %v623_v20 }
 0x1cd   : > { %v698_v17 = vpop.f32.mrf.mxu1 }
 0x1ce   : > { %v699_v27 = vadd.f32 %v698_v17, %v623_v20 }
 0x1d3   : > { %v672_v18 = vpop.f32.mrf.mxu0 }
 0x1d4   : > { %v673_v33 = vadd.f32 %v672_v18, %v628_v21 }
 0x1d5   : > { %v701_v19 = vpop.f32.mrf.mxu1 }
 0x1d6   : > { %v702_v24 = vadd.f32 %v701_v19, %v628_v21 }
 0x1d8   : > { %1111 = vtanh.f32 %v702_v24 }
 0x1d9   : > { %v727_v22 = vpop.f32.mrf.mxu2  ;;  %1113 = vtanh.f32 %v699_v27 }
 0x1da   : > { %v728_v47 = vadd.f32 %v727_v22, %v623_v20 }
 0x1db   : > { %v675_v23 = vpop.f32.mrf.mxu0 }
 0x1dc   : > { %v676_v36 = vadd.f32 %v675_v23, %v633_v26 }
 0x1dd   : > { %v704_v25 = vpop.f32.mrf.mxu1 }
 0x1de   : > { %v705_v28 = vadd.f32 %v704_v25, %v633_v26  ;;  %v1112_v39 = vpop.eup %1111 }
 0x1df   : > { %v756_v29 = vpop.f32.mrf.mxu3  ;;  %v1114_v41 = vpop.eup %1113  ;;  %v814_v46 = vmul.f32 %v1112_v39, %v797_v44 }
 0x1e0   : > { %1115 = vtanh.f32 %v705_v28  ;;  %v810_v52 = vmul.f32 %v1114_v41, %v1444_v34  ;;  %v757_v58 = vadd.f32 %v756_v29, %v623_v20 }
 0x1e1   : > { %v730_v32 = vpop.f32.mrf.mxu2  ;;  %1117 = vtanh.f32 %v670_v31 }
 0x1e2   : > { %1119 = vtanh.f32 %v673_v33  ;;  %v731_v45 = vadd.f32 %v730_v32, %v628_v21  ;;  %v834_v57 = vadd.f32 %v814_v46, %v810_v52  ;;  %v864_v52 = vpop.permute.xlu2 %863 }
 0x1e3   : > { %v678_v35 = vpop.f32.mrf.mxu0 }
 0x1e4   : > { %v679_v40 = vadd.f32 %v678_v35, %v1442_v30 }
 0x1e5   : > { %v707_v37 = vpop.f32.mrf.mxu1 }
 0x1e6   : > { %v708_v38 = vadd.f32 %v707_v37, %v1442_v30  ;;  %v1116_v43 = vpop.eup %1115 }
 0x1e7   : > { %v759_v42 = vpop.f32.mrf.mxu3  ;;  %v1118_v51 = vpop.eup %1117  ;;  %v818_v53 = vmul.f32 %v1116_v43, %v802_v49 }
 0x1e8   : > { %1121 = vtanh.f32 %v708_v38  ;;  %v1120_v54 = vpop.eup %1119  ;;  %v760_v60 = vadd.f32 %v759_v42, %v628_v21  ;;  %v809_v3 = vmul.f32 %v1118_v51, %v1444_v34 }
 0x1e9   : > { %1123 = vtanh.f32 %v676_v36  ;;  %v733_v48 = vpop.f32.mrf.mxu2  ;;  %v813_v62 = vmul.f32 %v1120_v54, %v797_v44  ;;  %v835_v63 = vadd.f32 %v834_v57, %v818_v53  ;;  %v866_v57 = vperm.slane %v864_v52, 0 }
 0x1ea   : > { %1125 = vtanh.f32 %v679_v40  ;;  %v734_v50 = vadd.f32 %v733_v48, %v633_v26 }
 0x1eb   : > { %1127 = vtanh.f32 %v731_v45  ;;  %v825_v10 = vadd.f32 %v813_v62, %v809_v3 }
 0x1ec   : > { %1129 = vtanh.f32 %v728_v47 }
 0x1ed   : > { %1131 = vtanh.f32 %v734_v50 }
 0x1ee   : > { %v1122_v55 = vpop.eup %1121  ;;  %1133 = vtanh.f32 %v757_v58 }
 0x1ef   : > { %v1124_v59 = vpop.eup %1123  ;;  %v822_v61 = vmul.f32 %v1122_v55, %v807_v56  ;;  %v762_v0 = vpop.f32.mrf.mxu3  ;;  %1135 = vtanh.f32 %v760_v60 }
 0x1f0   : > { %v1126_v1 = vpop.eup %1125  ;;  %v763_v2 = vadd.f32 %v762_v0, %v633_v26  ;;  %v817_v4 = vmul.f32 %v1124_v59, %v802_v49  ;;  %v885_v0 = vlaneseq }
 0x1f1   : > { %v836_v5 = vadd.f32 %v835_v63, %v822_v61  ;;  %v736_v6 = vpop.f32.mrf.mxu2  ;;  %v1128_v7 = vpop.eup %1127  ;;  %v821_v11 = vmul.f32 %v1126_v1, %v807_v56 }
 0x1f2   : > { %v737_v8 = vadd.f32 %v736_v6, %v1442_v30  ;;  %v1130_v9 = vpop.eup %1129  ;;  %1137 = vtanh.f32 %v763_v2  ;;  %v826_v13 = vadd.f32 %v825_v10, %v817_v4  ;;  %v815_v14 = vmul.f32 %v1128_v7, %v797_v44 }
 0x1f3   : > { %v1132_v12 = vpop.eup %1131  ;;  %v837_v15 = vrot.slane %v836_v5, 4  ;;  %v811_v17 = vmul.f32 %v1130_v9, %v1444_v34  ;;  %vm887_vm4 = vcmp.lt.s32.totalorder %v885_v0, 512 }
 0x1f4   : > { %1139 = vtanh.f32 %v737_v8  ;;  %v1134_v16 = vpop.eup %1133  ;;  %v827_v18 = vadd.f32 %v826_v13, %v821_v11  ;;  %v819_v19 = vmul.f32 %v1132_v12, %v802_v49 }
 0x1f5   : > { %v1136_v21 = vpop.eup %1135  ;;  %v843_v24 = vadd.f32 %v815_v14, %v811_v17  ;;  %v838_v25 = vadd.f32 %v837_v15, %v836_v5  ;;  %v812_v32 = vmul.f32 %v1134_v16, %v1444_v34 }
 0x1f6   : > { %v816_v27 = vmul.f32 %v1136_v21, %v797_v44  ;;  %v828_v28 = vrot.slane %v827_v18, 4 }
 0x1f7   : > { %v765_v20 = vpop.f32.mrf.mxu3  ;;  %v844_v29 = vadd.f32 %v843_v24, %v819_v19  ;;  %v839_v33 = vrot.slane %v838_v25, 2 }
 0x1f8   : > { %v766_v22 = vadd.f32 %v765_v20, %v1442_v30  ;;  %v1138_v23 = vpop.eup %1137  ;;  %v852_v37 = vadd.f32 %v816_v27, %v812_v32  ;;  %v829_v38 = vadd.f32 %v828_v28, %v827_v18 }
 0x1f9   : > { %v820_v35 = vmul.f32 %v1138_v23, %v802_v49  ;;  %v840_v30 = vadd.f32 %v839_v33, %v838_v25 }
 0x1fa   : > { %v1140_v26 = vpop.eup %1139  ;;  %1141 = vtanh.f32 %v766_v22  ;;  %v830_v45 = vrot.slane %v829_v38, 2 }
 0x1fb   : > { %v823_v31 = vmul.f32 %v1140_v26, %v807_v56  ;;  %v853_v41 = vadd.f32 %v852_v37, %v820_v35  ;;  %v841_v47 = vrot.slane %v840_v30, 1 }
 0x1fc   : > { %v831_v34 = vadd.f32 %v830_v45, %v829_v38 }
 0x1fd   : > { %v845_v36 = vadd.f32 %v844_v29, %v823_v31  ;;  %v842_v54 = vadd.f32 %v841_v47, %v840_v30 }
 0x1fe   : > { %v832_v58 = vrot.slane %v831_v34, 1 }
 0x1ff   : > { %v846_v39 = vrot.slane %v845_v36, 4  ;;  %v868_v60 = vadd.f32 %v866_v57, %v842_v54 }
 0x200   : > { %v1142_v40 = vpop.eup %1141  ;;  %v833_v62 = vadd.f32 %v832_v58, %v831_v34 }
 0x201   : > { %v847_v42 = vadd.f32 %v846_v39, %v845_v36  ;;  %v824_v43 = vmul.f32 %v1142_v40, %v807_v56  ;;  %v875_v2 = vrot.slane %v868_v60, 7 }
 0x202   : > { %v867_v4 = vadd.f32 %v866_v57, %v833_v62 }
 0x203   : > { %v848_v46 = vrot.slane %v847_v42, 2  ;;  %v854_v44 = vadd.f32 %v853_v41, %v824_v43 }
 0x204   : > { %v879_v6 = vsel %vm878_vm1, %v867_v4, %v875_v2 }
 0x205   : > { %v849_v48 = vadd.f32 %v848_v46, %v847_v42  ;;  %v855_v50 = vrot.slane %v854_v44, 4 }
 0x207   : > { %v850_v51 = vrot.slane %v849_v48, 1  ;;  %v856_v49 = vadd.f32 %v855_v50, %v854_v44 }
 0x209   : > { %v857_v53 = vrot.slane %v856_v49, 2  ;;  %v851_v55 = vadd.f32 %v850_v51, %v849_v48 }
 0x20b   : > { %v858_v59 = vadd.f32 %v857_v53, %v856_v49  ;;  %v869_v61 = vadd.f32 %v866_v57, %v851_v55 }
 0x20d   : > { %v859_v56 = vrot.slane %v858_v59, 1  ;;  %v876_v3 = vrot.slane %v869_v61, 6 }
 0x20f   : > { %v860_v63 = vadd.f32 %v859_v56, %v858_v59 }
 0x211   : > { %v870_v1 = vadd.f32 %v866_v57, %v860_v63 }
 0x213   : > { %v877_v5 = vrot.slane %v870_v1, 5 }
 0x215   : > { %v881_v7 = vsel %vm880_vm2, %v876_v3, %v877_v5 }
 0x216   : > { %v883_v8 = vsel %vm882_vm3, %v879_v6, %v881_v7 }
 0x217   : > { %889 = vst.msk [vmem:[%s326_s22] sm:$0xf] %vm887_vm4, %v883_v8 }
 0x218   : > { %1170 = shalt.err (!%p1167_p3)
}
 0x219   : > { %1004 = dma.vmem_to_hbm [thread:$0]  (%p1298_p5), %s904_s24, 64, %s906_s25, %s891_s23  }
 0x21a PF: > { %p1010_p4 = scmp.ge.s32.totalorder %s1205_s14, 2  ;;  %s917_s30 = sand.u32 1, %s1193_s11  }
 0x21b   : > { %s918_s17 = scalar_lea.sflag [#allocation4], %s917_s30 }
 0x21c   : > { %p1007_p7 = pnand %p1010_p4, %p1302_p6 }
 0x21e   : > { %p1008_p8 = pneg %p1007_p7 }
 0x220   : > { %1188 = dma.done.wait (%p1008_p8), %s918_s17, 64  }
 0x221   : > { %1190 = vsyncadd (%p1008_p8), %s918_s17, 4294967232  ;;  %p21_p9 = scmp.ge.s32.totalorder %s1284_s16, 4   ;;  %s1502_s11 = smov %s1197_s12 }
 0x222   : > { %s1503_s12 = smov %s1201_s13  ;;  %s1504_s13 = smov %s1296_s19 }
 0x223   : > { %s1505_s14 = smov %s1284_s16  ;;  %23 = sbr.rel (!%p21_p9) target bundleno = 6 (0x6), region = 91 }
 0x228   :  { %924 = vsyncpa [#allocation4], 1 }
 0x229   :  { %926 = vsyncpa [#allocation4 + $0x1], 1 }

</bundles_post_ra>
